<compile_context>
chip_gen: v5e
topology: v5e:2x2
jax: 0.10.0
libtpu: 0.0.40
codegen_flags: <defaults>
</compile_context>

<pallas_src>
import math
import numpy as np
import jax
import jax.numpy as jnp
from jax import lax
from jax.experimental import pallas as pl
from jax.experimental.pallas import tpu as pltpu

BN_EPS = 1e-5
NEG = -1e9   # logit bias for lane-padded class columns (real logits >> -1e9)


# ------------------------------ sizing helpers ------------------------------

def _round_up(v, m):
    return ((v + m - 1) // m) * m


def _vmem_limit_bytes():
    """Generation-aware scoped-VMEM limit (v5e/v6e ~96 MiB, v7x ~48 MiB)."""
    cap = 64 * 1024 * 1024
    try:
        cap = int(getattr(pltpu.get_tpu_info(), "vmem_capacity_bytes", cap))
    except Exception:
        pass
    return int(min(max(cap * 3 // 4, 32 * 1024 * 1024), 100 * 1024 * 1024))


def _pick_tile_hw(HW, C5, s_pad, c_ppm, budget, want=2048):
    """Largest multiple-of-128 HW tile that keeps pool+expand under budget."""
    t = max(128, min(_round_up(want, 128), _round_up(HW, 128)))
    while t > 128:
        pool_vm = 2 * t * C5 * 2 + 2 * s_pad * t * 2 + 3 * s_pad * C5 * 4
        exp_vm = 2 * t * s_pad * 2 + 2 * s_pad * c_ppm * 2 + 2 * t * c_ppm * 2
        if max(pool_vm, exp_vm) <= budget:
            break
        t -= 128
    return t


def _pick_tile_k(chans, want):
    """Channel slab that divides every part and is lane-legal for each."""
    g = chans[0]
    for c in chans[1:]:
        g = math.gcd(g, c)
    divs = sorted((d for d in range(1, g + 1) if g % d == 0), reverse=True)

    def legal(d):
        return d % 8 == 0 and all(d % 128 == 0 or d == c for c in chans)

    for d in divs:
        if d <= want and legal(d):
            return d
    for d in divs:
        if legal(d):
            return d
    # TODO(synk): pad channel counts to a lane multiple instead of failing.
    raise ValueError(f"no legal channel tile for channel counts {chans}")


def _choose_tile_h(H, W, N, nparts, tk, cmid, ncls_pad, budget, want=None):
    """Largest divisor of H whose head working set fits the VMEM budget.
    Keeps >=2 units of parallel grid work when N == 1 (v7x dual TensorCore)."""
    divs = sorted((d for d in range(1, H + 1) if H % d == 0), reverse=True)
    if want is not None:
        for d in divs:
            if d <= want:
                return d
        return 1

    def vmem(d):
        return (2 * nparts * d * W * tk * 2          # main blocks (dbl buffered)
                + 4 * nparts * W * tk * 2            # halo rows
                + (d + 2) * (W + 2) * tk * 2         # xpad scratch
                + d * W * cmid * 4                   # f32 accumulator
                + 2 * d * W * ncls_pad * 2           # bf16 output blocks
                + 2 * 9 * tk * cmid * 2              # w3 slab (dbl buffered)
                + 2 * cmid * ncls_pad * 2            # 1x1 class weight
                + 4 * (2 * cmid + ncls_pad) * 4)     # scale / bias / class bias

    cap = H if N >= 2 else max(H // 2, 1)
    for d in divs:
        if d <= cap and vmem(d) <= budget:
            return d
    for d in divs:
        if vmem(d) <= budget:
            return d
    return 1


# ------------------------------ Pallas kernels ------------------------------

def _make_pool_kernel(HW, thw):
    ragged = (HW % thw) != 0

    def kernel(x_ref, pool_ref, out_ref, acc_ref):
        # x: (1, thw, C5) bf16   pool: (s_pad, thw) bf16 (binary membership)
        # out: (1, s_pad, C5) f32   acc: (s_pad, C5) f32
        t = pl.program_id(1)

        @pl.when(t == 0)
        def _():
            acc_ref[...] = jnp.zeros_like(acc_ref)

        x = x_ref[0]
        p = pool_ref[...]
        if ragged:  # NaN-safe masking of the padded HW tail (both operands)
            rows = t * thw + lax.broadcasted_iota(jnp.int32, (thw, 1), 0)
            cols = t * thw + lax.broadcasted_iota(jnp.int32, (1, thw), 1)
            x = jnp.where(rows < HW, x, jnp.zeros_like(x))
            p = jnp.where(cols < HW, p, jnp.zeros_like(p))
        acc_ref[...] += jnp.dot(p, x, preferred_element_type=jnp.float32)

        @pl.when(t == pl.num_programs(1) - 1)
        def _():
            out_ref[0] = acc_ref[...]

    return kernel


def _ppm_expand_kernel(interp_ref, y_ref, out_ref):
    # interp: (thw, s_pad) bf16   y: (1, s_pad, c_ppm) bf16
    # out: (1, thw, c_ppm) bf16  -- only the new PPM channels (no conv5 copy).
    out_ref[0] = jnp.dot(interp_ref[...], y_ref[0],
                         preferred_element_type=jnp.float32).astype(out_ref.dtype)


def _make_head_kernel(nparts, part_nk, th, W, tk):
    offs = [0]
    for c in part_nk:
        offs.append(offs[-1] + c)

    def kernel(*refs):
        # per part: xc (1, th, W, tk), xt/xb (1, 1, W, tk)   then:
        # w3 (9, tk, cmid), scale/bias (1, cmid), w1 (cmid, ncls_pad),
        # b1 (1, ncls_pad), out (1, th, W, ncls_pad) bf16,
        # acc (th*W, cmid) f32, xpad (th+2, W+2, tk) bf16.
        xparts = [refs[3 * p:3 * p + 3] for p in range(nparts)]
        (w3_ref, scale_ref, bias_ref, w1_ref, b1_ref,
         out_ref, acc_ref, xpad_ref) = refs[3 * nparts:]
        h = pl.program_id(1)
        k = pl.program_id(2)
        nh = pl.num_programs(1)
        nk = pl.num_programs(2)

        # Assemble the zero-padded halo tile for the active channel part.
        zcol = jnp.zeros((th + 2, 1, tk), xpad_ref.dtype)
        xpad_ref[:, 0:1, :] = zcol
        xpad_ref[:, W + 1:W + 2, :] = zcol
        top_ok = (h > 0).astype(xpad_ref.dtype)       # zero halo at image top
        bot_ok = (h < nh - 1).astype(xpad_ref.dtype)  # zero halo at bottom

        def fill(xc_ref, xt_ref, xb_ref):
            xpad_ref[1:th + 1, 1:W + 1, :] = xc_ref[0]
            xpad_ref[0:1, 1:W + 1, :] = xt_ref[0] * top_ok
            xpad_ref[th + 1:th + 2, 1:W + 1, :] = xb_ref[0] * bot_ok

        if nparts == 1:
            fill(*xparts[0])
        else:
            for p in range(nparts):
                @pl.when(jnp.logical_and(k >= offs[p], k < offs[p + 1]))
                def _(p=p):
                    fill(*xparts[p])

        @pl.when(k == 0)
        def _():
            acc_ref[...] = jnp.zeros_like(acc_ref)

        # 3x3 conv as 9 accumulating MXU matmuls.  One shifted column-band
        # load per kx (3 relayouts per step instead of 9); the ky selection is
        # an outer-dim slice + (W % 8 == 0) free reshape.
        acc = acc_ref[...]
        for kx in range(3):
            band = xpad_ref[:, kx:kx + W, :]          # (th+2, W, tk)
            for ky in range(3):
                tap = band[ky:ky + th].reshape(th * W, tk)
                acc = acc + jnp.dot(tap, w3_ref[3 * ky + kx],
                                    preferred_element_type=jnp.float32)
        acc_ref[...] = acc

        @pl.when(k == nk - 1)
        def _():
            # BN + ReLU (+ Dropout2d = identity in eval), 1x1 conv with bias,
            # masked log-softmax over lane-padded classes -- all f32 math,
            # bf16 store (halves output HBM traffic).
            mid = jnp.maximum(acc_ref[...] * scale_ref[...] + bias_ref[...], 0.0)
            logits = jnp.dot(mid.astype(jnp.bfloat16), w1_ref[...],
                             preferred_element_type=jnp.float32) + b1_ref[...]
            m = jnp.max(logits, axis=-1, keepdims=True)
            z = logits - m
            lse = jnp.log(jnp.sum(jnp.exp(z), axis=-1, keepdims=True))
            out_ref[0] = (z - lse).reshape(th, W, -1).astype(out_ref.dtype)

    return kernel


# ---------------------------- pallas_call wrappers ----------------------------

def ppm_pool(x_flat, pool01, *, tile_hw, vmem_limit):
    N, HW, C5 = x_flat.shape
    s_pad = pool01.shape[0]
    grid = (N, pl.cdiv(HW, tile_hw))
    return pl.pallas_call(
        _make_pool_kernel(HW, tile_hw),
        out_shape=jax.ShapeDtypeStruct((N, s_pad, C5), jnp.float32),
        grid=grid,
        in_specs=[
            pl.BlockSpec((1, tile_hw, C5), lambda n, t: (n, t, 0)),
            pl.BlockSpec((s_pad, tile_hw), lambda n, t: (0, t)),
        ],
        out_specs=pl.BlockSpec((1, s_pad, C5), lambda n, t: (n, 0, 0)),
        scratch_shapes=[pltpu.VMEM((s_pad, C5), jnp.float32)],
        compiler_params=pltpu.CompilerParams(
            dimension_semantics=("parallel", "arbitrary"),
            vmem_limit_bytes=vmem_limit),
    )(x_flat, pool01)


def ppm_expand(interp, y_all, *, tile_hw, vmem_limit):
    HW, s_pad = interp.shape
    N, _, c_ppm = y_all.shape
    grid = (N, pl.cdiv(HW, tile_hw))
    return pl.pallas_call(
        _ppm_expand_kernel,
        out_shape=jax.ShapeDtypeStruct((N, HW, c_ppm), jnp.bfloat16),
        grid=grid,
        in_specs=[
            pl.BlockSpec((tile_hw, s_pad), lambda n, t: (t, 0)),
            pl.BlockSpec((1, s_pad, c_ppm), lambda n, t: (n, 0, 0)),
        ],
        out_specs=pl.BlockSpec((1, tile_hw, c_ppm), lambda n, t: (n, t, 0)),
        compiler_params=pltpu.CompilerParams(
            dimension_semantics=("parallel", "parallel"),
            vmem_limit_bytes=vmem_limit),
    )(interp, y_all)


def conv3x3_head(parts, w3, scale, bias, w1, b1, *, tile_h=None, tile_k=None,
                 vmem_limit=None):
    """Fused 3x3 conv (+BN+ReLU) + 1x1(bias) + log-softmax over the channel
    concatenation of `parts` (list of NHWC bf16 arrays)."""
    vmem_limit = vmem_limit or _vmem_limit_bytes()
    N, H, W, _ = parts[0].shape
    for p in parts:
        assert p.shape[:3] == (N, H, W)
    chans = [int(p.shape[-1]) for p in parts]
    c_tot = sum(chans)
    nine, c_w, cmid = w3.shape
    assert nine == 9 and c_w == c_tot
    ncls_pad = int(w1.shape[1])

    tk = _pick_tile_k(chans, tile_k or 512)
    part_nk = [c // tk for c in chans]
    nk = sum(part_nk)
    budget = int(vmem_limit * 0.9)
    th = _choose_tile_h(H, W, N, len(parts), tk, cmid, ncls_pad, budget,
                        want=tile_h)
    nh = H // th
    grid = (N, nh, nk)

    offs = [0]
    for c in part_nk:
        offs.append(offs[-1] + c)

    in_specs = []
    for p in range(len(parts)):
        off, cnt = offs[p], part_nk[p]

        def kmap(k, off=off, cnt=cnt):  # clamp to this part's slab range
            return jnp.minimum(jnp.maximum(k - off, 0), cnt - 1)

        in_specs += [
            pl.BlockSpec((1, th, W, tk),
                         lambda n, h, k, kmap=kmap: (n, h, 0, kmap(k))),
            pl.BlockSpec((1, 1, W, tk),
                         lambda n, h, k, kmap=kmap:
                         (n, jnp.maximum(h * th - 1, 0), 0, kmap(k))),
            pl.BlockSpec((1, 1, W, tk),
                         lambda n, h, k, kmap=kmap:
                         (n, jnp.minimum(h * th + th, H - 1), 0, kmap(k))),
        ]
    in_specs += [
        pl.BlockSpec((9, tk, cmid), lambda n, h, k: (0, k, 0)),
        pl.BlockSpec((1, cmid), lambda n, h, k: (0, 0)),
        pl.BlockSpec((1, cmid), lambda n, h, k: (0, 0)),
        pl.BlockSpec((cmid, ncls_pad), lambda n, h, k: (0, 0)),
        pl.BlockSpec((1, ncls_pad), lambda n, h, k: (0, 0)),
    ]

    flops = 2 * N * H * W * (9 * c_tot * cmid + cmid * ncls_pad)
    bytes_accessed = int(sum(int(p.size) for p in parts) * 2
                         + N * nh * int(w3.size) * 2
                         + N * H * W * ncls_pad * 2 + int(w1.size) * 2)
    cost = pl.CostEstimate(flops=flops, transcendentals=N * H * W * ncls_pad,
                           bytes_accessed=bytes_accessed)

    args = []
    for p in parts:
        args += [p, p, p]
    args += [w3, scale, bias, w1, b1]

    return pl.pallas_call(
        _make_head_kernel(len(parts), part_nk, th, W, tk),
        out_shape=jax.ShapeDtypeStruct((N, H, W, ncls_pad), jnp.bfloat16),
        grid=grid,
        in_specs=in_specs,
        out_specs=pl.BlockSpec((1, th, W, ncls_pad), lambda n, h, k: (n, h, 0, 0)),
        scratch_shapes=[
            pltpu.VMEM((th * W, cmid), jnp.float32),
            pltpu.VMEM((th + 2, W + 2, tk), jnp.bfloat16),
        ],
        compiler_params=pltpu.CompilerParams(
            dimension_semantics=("parallel", "parallel", "arbitrary"),
            vmem_limit_bytes=vmem_limit),
        cost_estimate=cost,
    )(*args)


# ------------------------------ host-side constants ------------------------------

def _adaptive_bins(in_size, out_size):
    # PyTorch AdaptiveAvgPool2d bin boundaries; binary membership matrix.
    M = np.zeros((out_size, in_size), np.float32)
    for i in range(out_size):
        s = (i * in_size) // out_size
        e = -(-((i + 1) * in_size) // out_size)  # ceil
        M[i, s:e] = 1.0
    return M


def _bilinear_1d(in_size, out_size):
    # Matches F.interpolate(mode='bilinear', align_corners=False).
    A = np.zeros((out_size, in_size), np.float32)
    scale = in_size / out_size
    for d in range(out_size):
        src = max((d + 0.5) * scale - 0.5, 0.0)
        x0 = int(np.floor(src))
        x1 = min(x0 + 1, in_size - 1)
        l1 = src - x0
        A[d, x0] += 1.0 - l1
        A[d, x1] += l1
    return A


def _build_ppm_consts(H, W, pool_scales, inner):
    """Binary pool-membership (s_pad, HW), bin counts, stacked bilinear interp
    (HW, s_pad) and the (row, column-block) mask for the stacked 1x1 conv."""
    HW = H * W
    s_total = sum(s * s for s in pool_scales)
    s_pad = _round_up(s_total, 8)
    pool01 = np.zeros((s_pad, HW), np.float32)
    interp = np.zeros((HW, s_pad), np.float32)
    mask = np.zeros((s_pad, len(pool_scales) * inner), np.float32)
    off = 0
    for si, s in enumerate(pool_scales):
        Ph, Pw = _adaptive_bins(H, s), _adaptive_bins(W, s)
        Ah, Aw = _bilinear_1d(s, H), _bilinear_1d(s, W)
        pool01[off:off + s * s] = np.kron(Ph, Pw)
        interp[:, off:off + s * s] = np.kron(Ah, Aw)
        mask[off:off + s * s, si * inner:(si + 1) * inner] = 1.0
        off += s * s
    counts = pool01.sum(axis=1)
    counts[counts == 0.0] = 1.0
    return pool01, counts.reshape(s_pad, 1), interp, mask


def _pad_classes(w, b, ncls_pad):
    """Zero-pad the 1x1 class conv to a lane multiple; padded biases = -1e9."""
    ncls = w.shape[-1]
    wpad = jnp.zeros((w.shape[0], ncls_pad), jnp.bfloat16)
    wpad = wpad.at[:, :ncls].set(w.astype(jnp.bfloat16))
    bpad = jnp.full((1, ncls_pad), NEG, jnp.float32)
    bpad = bpad.at[0, :ncls].set(b.astype(jnp.float32))
    return wpad, bpad


# --------------------------------- parameters ---------------------------------

def init_params(key, num_class, fc_dim, inner, pool_scales):
    C5, C4, Cds = fc_dim, fc_dim // 2, fc_dim // 4
    ns = len(pool_scales)
    c_cat = C5 + ns * inner
    keys = iter(jax.random.split(key, 32))

    def nrm(shape, sc=0.05):
        return jax.random.normal(next(keys), shape, jnp.float32) * sc

    def bn(c):
        gamma = jax.random.uniform(next(keys), (c,), jnp.float32, 0.5, 1.5)
        beta = nrm((c,), 0.1)
        mean = nrm((c,), 0.1)
        var = jax.random.uniform(next(keys), (c,), jnp.float32, 0.5, 1.5)
        scale = gamma / jnp.sqrt(var + BN_EPS)
        return scale, beta - mean * scale

    p = {}
    p["ppm_w"] = nrm((C5, ns * inner))                 # 4 stacked PPM 1x1 convs
    p["ppm_scale"], p["ppm_bias"] = bn(ns * inner)
    p["cl1_w"] = nrm((3, 3, c_cat, inner))             # conv_last 3x3 (HWIO)
    p["cl1_scale"], p["cl1_bias"] = bn(inner)
    p["cl2_w"] = nrm((inner, num_class))               # conv_last 1x1 (+bias)
    p["cl2_b"] = nrm((num_class,))
    p["ds1_w"] = nrm((3, 3, C4, Cds))                  # cbr_deepsup 3x3
    p["ds1_scale"], p["ds1_bias"] = bn(Cds)
    p["ds2_w"] = nrm((Cds, num_class))                 # conv_last_deepsup 1x1
    p["ds2_b"] = nrm((num_class,))
    return p


# ---------------------------------- forward ----------------------------------

def ppm_deepsup_forward(conv_out, params, pool_scales=(1, 2, 3, 6), *,
                        tile_hw=None, tile_h=None, tile_k=None):
    conv4_nchw, conv5_nchw = conv_out[-2], conv_out[-1]
    N, C5, H, W = conv5_nchw.shape
    HW = H * W
    ns = len(pool_scales)
    inner = params["cl1_w"].shape[-1]
    c_ppm = ns * inner
    num_class = params["cl2_w"].shape[-1]
    ncls_pad = _round_up(num_class, 128)

    vmem_limit = _vmem_limit_bytes()
    budget = int(vmem_limit * 0.9)

    pool01, counts, interp, mask = _build_ppm_consts(H, W, pool_scales, inner)
    s_pad = pool01.shape[0]

    if tile_hw is None:
        thw = _pick_tile_hw(HW, C5, s_pad, c_ppm, budget)
    else:
        thw = max(128, (int(tile_hw) // 128) * 128)

    conv5_nhwc = jnp.transpose(conv5_nchw, (0, 2, 3, 1)).astype(jnp.bfloat16)
    conv5_flat = conv5_nhwc.reshape(N, HW, C5)

    # Stage 1: pooled bin sums (conv5 streamed once, HW-tiled f32 reduction).
    pooled_sum = ppm_pool(conv5_flat, jnp.asarray(pool01, jnp.bfloat16),
                          tile_hw=thw, vmem_limit=vmem_limit)
    # Tiny XLA epilogue: count-normalize + stacked 1x1 conv + BN + ReLU + mask.
    pooled = pooled_sum / jnp.asarray(counts)[None]
    z = jnp.einsum("nsc,cd->nsd", pooled, params["ppm_w"])
    z = jnp.maximum(z * params["ppm_scale"] + params["ppm_bias"], 0.0)
    y_all = (z * jnp.asarray(mask)).astype(jnp.bfloat16)

    # Stage 2: bilinear upsample of all PPM scales (only the new channels).
    up = ppm_expand(jnp.asarray(interp, jnp.bfloat16), y_all,
                    tile_hw=thw, vmem_limit=vmem_limit)
    up_nhwc = up.reshape(N, H, W, c_ppm)

    # Stage 3: conv_last = 3x3 conv + BN + ReLU + Dropout(identity) + 1x1(bias)
    # + log_softmax, K-concatenating [conv5, up] inside the kernel (no x_cat).
    w3 = params["cl1_w"].reshape(9, C5 + c_ppm, inner).astype(jnp.bfloat16)
    w1, b1 = _pad_classes(params["cl2_w"], params["cl2_b"], ncls_pad)
    x = conv3x3_head([conv5_nhwc, up_nhwc], w3,
                     params["cl1_scale"][None], params["cl1_bias"][None],
                     w1, b1, tile_h=tile_h, tile_k=tile_k,
                     vmem_limit=vmem_limit)
    x = jnp.transpose(x[..., :num_class], (0, 3, 1, 2)).astype(jnp.float32)

    # Deep supervision branch on conv4 (same fused head, single channel part).
    C4 = conv4_nchw.shape[1]
    Cds = params["ds1_w"].shape[-1]
    conv4_nhwc = jnp.transpose(conv4_nchw, (0, 2, 3, 1)).astype(jnp.bfloat16)
    w3d = params["ds1_w"].reshape(9, C4, Cds).astype(jnp.bfloat16)
    w1d, b1d = _pad_classes(params["ds2_w"], params["ds2_b"], ncls_pad)
    d = conv3x3_head([conv4_nhwc], w3d,
                     params["ds1_scale"][None], params["ds1_bias"][None],
                     w1d, b1d, tile_h=tile_h, tile_k=tile_k,
                     vmem_limit=vmem_limit)
    d = jnp.transpose(d[..., :num_class], (0, 3, 1, 2)).astype(jnp.float32)

    # TODO(synk): use_softmax=True inference branch (bilinear resize to segSize
    # + channel softmax) is not implemented.
    return x, d


# ------------------------- pure-JAX reference (f32) -------------------------

def reference_forward(conv_out, params, pool_scales=(1, 2, 3, 6)):
    conv4_nchw, conv5_nchw = conv_out[-2], conv_out[-1]
    N, C5, H, W = conv5_nchw.shape
    HW = H * W
    inner = params["cl1_w"].shape[-1]
    pool01, counts, interp, mask = _build_ppm_consts(H, W, pool_scales, inner)

    x5 = jnp.transpose(conv5_nchw, (0, 2, 3, 1)).reshape(N, HW, C5)
    pooled = jnp.einsum("sp,npc->nsc", jnp.asarray(pool01), x5)
    pooled = pooled / jnp.asarray(counts)[None]
    z = jnp.einsum("nsc,cd->nsd", pooled, params["ppm_w"])
    z = jnp.maximum(z * params["ppm_scale"] + params["ppm_bias"], 0.0)
    z = z * jnp.asarray(mask)
    up = jnp.einsum("ps,nsd->npd", jnp.asarray(interp), z)
    xcat = jnp.concatenate([x5, up], axis=-1).reshape(N, H, W, -1)

    def head(xx, w3, s, b, w1, b1):
        mid = lax.conv_general_dilated(xx, w3, (1, 1), "SAME",
                                       dimension_numbers=("NHWC", "HWIO", "NHWC"))
        mid = jnp.maximum(mid * s + b, 0.0)
        logits = jnp.einsum("nhwc,cd->nhwd", mid, w1) + b1
        return jax.nn.log_softmax(logits, axis=-1)

    x = head(xcat, params["cl1_w"], params["cl1_scale"], params["cl1_bias"],
             params["cl2_w"], params["cl2_b"])
    conv4 = jnp.transpose(conv4_nchw, (0, 2, 3, 1))
    d = head(conv4, params["ds1_w"], params["ds1_scale"], params["ds1_bias"],
             params["ds2_w"], params["ds2_b"])
    return jnp.transpose(x, (0, 3, 1, 2)), jnp.transpose(d, (0, 3, 1, 2))


# ------------------------------------ main ------------------------------------

def _rel_err(a, b):
    a = a.astype(jnp.float32).ravel()
    b = b.astype(jnp.float32).ravel()
    return float(jnp.linalg.norm(a - b) / (jnp.linalg.norm(b) + 1e-12))


if __name__ == "__main__":
    key = jax.random.PRNGKey(0)
    kp, k4, k5 = jax.random.split(key, 3)

    # Small stand-ins for (num_class=150, fc_dim=4096, inner=512).
    num_class, fc_dim, inner = 16, 128, 64
    pool_scales = (1, 2, 3, 6)
    N, H, W = 2, 16, 16

    params = init_params(kp, num_class, fc_dim, inner, pool_scales)
    conv5 = jax.random.normal(k5, (N, fc_dim, H, W), jnp.float32)        # NCHW
    conv4 = jax.random.normal(k4, (N, fc_dim // 2, H, W), jnp.float32)   # NCHW

    xr, dr = reference_forward([conv4, conv5], params, pool_scales)

    # (1) Production defaults: VMEM-budgeted, generation-aware auto tiling.
    x, d = ppm_deepsup_forward([conv4, conv5], params, pool_scales)
    jax.block_until_ready((x, d))
    assert x.shape == (N, num_class, H, W) and d.shape == (N, num_class, H, W)
    assert bool(jnp.all(jnp.isfinite(x))) and bool(jnp.all(jnp.isfinite(d)))
    assert _rel_err(x, xr) < 0.05, _rel_err(x, xr)
    assert _rel_err(d, dr) < 0.05, _rel_err(d, dr)

    # (2) Forced small tiles: exercises the multi-tile HW reduction, multi-row
    #     tile halos and the conv5/up K-part boundary crossing in the head.
    x2, d2 = ppm_deepsup_forward([conv4, conv5], params, pool_scales,
                                 tile_hw=128, tile_h=8, tile_k=128)
    jax.block_until_ready((x2, d2))
    assert _rel_err(x2, xr) < 0.05, _rel_err(x2, xr)
    assert _rel_err(d2, dr) < 0.05, _rel_err(d2, dr)

    print("KERNEL_OK")
</pallas_src>

<mosaic_0001>
module attributes {stable_mosaic.version = 11 : i64} {
  func.func @kernel(%arg0: i32, %arg1: i32, %arg2: memref<1x256x128xbf16, #tpu.memory_space<vmem>>, %arg3: memref<56x256xbf16, #tpu.memory_space<vmem>>, %arg4: memref<1x56x128xf32, #tpu.memory_space<vmem>>, %arg5: memref<56x128xf32, #tpu.memory_space<vmem>>) attributes {dimension_semantics = [#tpu.dimension_semantics<parallel>, #tpu.dimension_semantics<arbitrary>], iteration_bounds = array<i64: 2, 1>, scalar_prefetch = 0 : i64, scratch_operands = 1 : i64, tpu.core_type = #tpu.core_type<tc>, window_params = [{transform_indices = @transform_0, window_bounds = array<i64: 1, 256, 128>}, {transform_indices = @transform_1, window_bounds = array<i64: 56, 256>}, {transform_indices = @transform_2, window_bounds = array<i64: 1, 56, 128>}]} {
    %c0_i32 = arith.constant 0 : i32
    %0 = arith.cmpi eq, %arg1, %c0_i32 : i32
    %1 = arith.extui %0 : i1 to i32
    %c0_i32_0 = arith.constant 0 : i32
    %2 = arith.cmpi ne, %1, %c0_i32_0 : i32
    scf.if %2 {
      %cst_11 = arith.constant 0.000000e+00 : f32
      %13 = vector.broadcast %cst_11 : f32 to vector<56x128xf32>
      %c0_12 = arith.constant 0 : index
      %c0_13 = arith.constant 0 : index
      %14 = vector.load %arg5[%c0_12, %c0_13] : memref<56x128xf32, #tpu.memory_space<vmem>>, vector<56x128xf32>
      tpu.vector_store %arg5[%c0_12, %c0_13], %13 {strides = array<i32>} : memref<56x128xf32, #tpu.memory_space<vmem>>, vector<56x128xf32>,
    } else {
    }
    %c0 = arith.constant 0 : index
    %c0_1 = arith.constant 0 : index
    %c0_2 = arith.constant 0 : index
    %3 = vector.load %arg2[%c0, %c0_1, %c0_2] : memref<1x256x128xbf16, #tpu.memory_space<vmem>>, vector<1x256x128xbf16>
    %4 = vector.shape_cast %3 : vector<1x256x128xbf16> to vector<256x128xbf16>
    %c0_3 = arith.constant 0 : index
    %c0_4 = arith.constant 0 : index
    %5 = vector.load %arg3[%c0_3, %c0_4] : memref<56x256xbf16, #tpu.memory_space<vmem>>, vector<56x256xbf16>
    %c0_5 = arith.constant 0 : index
    %c0_6 = arith.constant 0 : index
    %6 = vector.load %arg5[%c0_5, %c0_6] : memref<56x128xf32, #tpu.memory_space<vmem>>, vector<56x128xf32>
    %cst = arith.constant dense<0.000000e+00> : vector<56x128xf32>
    %7 = tpu.matmul %5, %4, %cst {dimension_numbers = #tpu.dot_dimension_numbers<[1], [0], [0], [1], [0, 0, 1, 1], [], []>} : vector<56x256xbf16>, vector<256x128xbf16>, vector<56x128xf32> -> vector<56x128xf32>
    %8 = arith.addf %6, %7 : vector<56x128xf32>
    %c0_7 = arith.constant 0 : index
    %c0_8 = arith.constant 0 : index
    %9 = vector.load %arg5[%c0_7, %c0_8] : memref<56x128xf32, #tpu.memory_space<vmem>>, vector<56x128xf32>
    tpu.vector_store %arg5[%c0_7, %c0_8], %8 {strides = array<i32>} : memref<56x128xf32, #tpu.memory_space<vmem>>, vector<56x128xf32>,
    %c0_i32_9 = arith.constant 0 : i32
    %10 = arith.cmpi eq, %arg1, %c0_i32_9 : i32
    %11 = arith.extui %10 : i1 to i32
    %c0_i32_10 = arith.constant 0 : i32
    %12 = arith.cmpi ne, %11, %c0_i32_10 : i32
    scf.if %12 {
      %c0_11 = arith.constant 0 : index
      %c0_12 = arith.constant 0 : index
      %13 = vector.load %arg5[%c0_11, %c0_12] : memref<56x128xf32, #tpu.memory_space<vmem>>, vector<56x128xf32>
      %c0_13 = arith.constant 0 : index
      %c0_14 = arith.constant 0 : index
      %c0_15 = arith.constant 0 : index
      %14 = vector.load %arg4[%c0_13, %c0_14, %c0_15] : memref<1x56x128xf32, #tpu.memory_space<vmem>>, vector<1x56x128xf32>
      %15 = vector.shape_cast %14 : vector<1x56x128xf32> to vector<56x128xf32>
      %16 = vector.shape_cast %13 : vector<56x128xf32> to vector<1x56x128xf32>
      tpu.vector_store %arg4[%c0_13, %c0_14, %c0_15], %16 {strides = array<i32>} : memref<1x56x128xf32, #tpu.memory_space<vmem>>, vector<1x56x128xf32>,
    } else {
    }
    return
  }
  func.func @transform_0(%arg0: i32, %arg1: i32) -> (i32, i32, i32) {
    %c0_i32 = arith.constant 0 : i32
    %c0_i32_0 = arith.constant 0 : i32
    return %arg0, %arg1, %c0_i32 : i32, i32, i32
  }
  func.func @transform_1(%arg0: i32, %arg1: i32) -> (i32, i32) {
    %c0_i32 = arith.constant 0 : i32
    %c0_i32_0 = arith.constant 0 : i32
    return %c0_i32, %arg1 : i32, i32
  }
  func.func @transform_2(%arg0: i32, %arg1: i32) -> (i32, i32, i32) {
    %c0_i32 = arith.constant 0 : i32
    %c0_i32_0 = arith.constant 0 : i32
    %c0_i32_1 = arith.constant 0 : i32
    return %arg0, %c0_i32, %c0_i32_0 : i32, i32, i32
  }
}

</mosaic_0001>

<bundles_post_ra>
// kernel: tpu_custom_call.1
= control target key start
LH: loop header
LB: loop body
LE: loop exit
PB: predicated region body
PF: predicated region fallthrough
CT: control target
= control target key end

     0   :  { %7 = vsyncpa [#allocation4], 0  ;;  %s1166_s0 = inlined_call_operand.hbm [shape: bf16[2,256,128], index: 0, kind: input, shape index: {}]   ;;  %s1167_s1 = inlined_call_operand.hbm [shape: bf16[56,256], index: 1, kind: input, shape index: {}]   ;;  %s1168_s2 = inlined_call_operand.hbm [shape: f32[2,56,128], index: 2, kind: output, shape index: {}]  }
   0x1   :  { %9 = vsyncpa [#allocation4 + $0x1], 0 }
   0x2   :  { %10 = vsyncpa [#allocation7], 0 }
   0x3   :  { %11 = vsyncpa [#allocation5], 0 }
   0x4   :  { %13 = vsyncpa [#allocation5 + $0x1], 0  ;;  %s988_s9 = smov 0   ;;  %s990_s10 = smov 0  }
   0x5   :  { %s992_s11 = smov 0   ;;  %s994_s12 = smov 0  }
   0x6   :  { %s996_s13 = smov 0   ;;  %s998_s14 = smov 0  }
   0x7 LB: > { %s596_s15 = sadd.s32 4294967295, %s964_s14   ;;  %s597_s16 = sadd.s32 4294967294, %s964_s14   ;;  %s964_s14 = sphi %s998_s14, %s19_s14   ;;  %s960_s13 = sphi %s996_s13, %s1180_s13   ;;  %s956_s12 = sphi %s994_s12, %s1179_s12   ;;  %s952_s11 = sphi %s992_s11, %s1178_s11   ;;  %s948_s10 = sphi %s990_s10, %s1177_s10   ;;  %s944_s9 = sphi %s988_s9, %s1176_s9  }
   0x8   : > { %p53_p0 = scmp.ne.s32.totalorder %s948_s10, %s944_s9  ;;  %p1022_p1 = scmp.eq.s32.totalorder %s596_s15, 0 }
   0x9   : > { %p1026_p2 = scmp.eq.s32.totalorder %s596_s15, 1  ;;  %p109_p3 = scmp.eq.s32.totalorder %s597_s16, 1 }
   0xa   : > { %p1032_p4 = por %p1022_p1, %p53_p0  ;;  %p598_p5 = scmp.ge.s32.totalorder %s964_s14, 1 }
   0xb   : > { %p1037_p6 = por %p109_p3, %p53_p0  ;;  %p116_p7 = scmp.lt.s32.totalorder %s964_s14, 3 }
   0xc   : > { %s130_s23 = sshll.u32 %s1167_s1, 4  ;;  %s966_s25 = smov [#allocation6]   ;;  %s131_s23 = int_to_ptr.hbm [resolvable:$true] %s130_s23 }
   0xd   : > { %p1045_p8 = pnand %p598_p5, %p116_p7  ;;  %s132_s26 = sshll.u32 %s966_s25, 4  ;;  %s133_s26 = int_to_ptr.vmem [resolvable:$true] %s132_s26 }
   0xe   : > { %p600_p11 = scmp.ge.s32.totalorder %s964_s14, 2  ;;  %s967_s27 = smov 128  }
   0xf   : > { %p747_p9 = pneg %p1045_p8  ;;  %s968_s28 = smov 8  }
  0x10   : > { %s31_s29 = sadd.s32 1, %s960_s13  ;;  %s40_s30 = sadd.s32 1, %s952_s11 }
  0x11   : > { %p748_p10 = pnand %p747_p9, %p1022_p1  ;;  %p33_p12 = scmp.ge.s32.totalorder %s31_s29, 2 }
  0x12   : > { %p47_p13 = scmp.ne.s32.totalorder %s952_s11, %s948_s10  ;;  %p48_p0 = scmp.eq.s32.totalorder %s964_s14, 0 }
  0x13   : > { %750 = dma.hbm_to_vmem [thread:$0]  (!%p748_p10), %s131_s23, 896, %s133_s26, [#allocation7], %s967_s27, %s967_s27, %s968_s28  }
  0x14   : > { %s1182_s29 = smov (%p33_p12, %s31_s29), 0  ;;  %p1061_p3 = por %p48_p0, %p47_p13 }
  0x15   : > { %p1067_p5 = por %p1026_p2, %p47_p13  ;;  %s35_s5 = ssub.s32 %s960_s13, %s1182_s29 }
  0x16   : > { %p760_p7 = scmp.lt.s32.totalorder %s964_s14, 2  ;;  %p38_p9 = scmp.eq.s32.totalorder %s35_s5, 0 }
  0x17   : > { %s146_s6 = sand.u32 1, %s952_s11   ;;  %s698_s15 = sshll.u32 %s960_s13, 7 }
  0x18   : > { %s601_s7 = sshll.u32 %s146_s6, 7  ;;  %s157_s22 = scalar_lea.hbm %s1166_s0, %s698_s15 }
  0x19   : > { %s1076_s8 = scalar_select %p38_p9, %s952_s11, %s40_s30  }
  0x1a   : > { %s150_s23 = scalar_lea.vmem [#allocation3], %s601_s7  ;;  %s158_s18 = sshll.u32 %s157_s22, 4  ;;  %s159_s18 = int_to_ptr.hbm [resolvable:$true] %s158_s18 }
  0x1b   : > { %s160_s25 = sshll.u32 %s150_s23, 4  ;;  %p752_p2 = pnand %p760_p7, %p1061_p3  ;;  %s161_s25 = int_to_ptr.vmem [resolvable:$true] %s160_s25 }
  0x1c   : > { %s147_s26 = scalar_lea.sflag [#allocation4], %s146_s6  ;;  %s969_s27 = smov 64  }
  0x1d   : > { %s970_s28 = smov 4   ;;  %172 = sbr.rel (%p1045_p8) target bundleno = 226 (0xe2), region = 28 }
  0x1e   : > { %754 = dma.hbm_to_vmem [thread:$0]  (!%p752_p2), %s159_s18, 2048, %s161_s25, %s147_s26, %s969_s27, %s969_s27, %s970_s28  }
  0x1f   : > { %s1087_s30 = sand.u32 (!%p1045_p8), 1, %s948_s10  }
  0x20   : > { %s605_s5 = sshll.u32 (!%p1045_p8), %s1087_s30, 7  ;;  %s175_s7 = scalar_lea.sflag (!%p1045_p8), [#allocation4], %s1087_s30 }
  0x21   : > { %s1091_s15 = scalar_lea.vmem (!%p1045_p8), [#allocation3], %s605_s5 }
  0x22   : > { %931 = dma.done.wait (%p1032_p4), %s175_s7, 2048  }
  0x23   : > { %933 = vsyncadd (%p1032_p4), %s175_s7, 4294965248 }
  0x24   : > { %935 = dma.done.wait (%p1022_p1), [#allocation7], 896  }
  0x25   : > { %937 = vsyncadd (%p1022_p1), [#allocation7], 4294966400  ;;  %v706_v0 = vld [vmem:[%s1091_s15 + $0x38] sm:$0xff]  ;;  %v705_v2 = vld [vmem:[%s1091_s15 + $0x30] sm:$0xff]  ;;  %s737_s17 = smul.u32 56, %s1087_s30  ;;  %s898_s27 = scalar_lea.hbm %s1168_s2, 112 }
  0x26   : > { %v714_v1 = vld [vmem:[%s1091_s15 + $0x78] sm:$0xff]  ;;  %397 = vmatpush.bf16.msra.mxu0 %v706_v0  ;;  %721 = vmatpush.bf16.msra.mxu2 %v706_v0  ;;  %v713_v3 = vld [vmem:[%s1091_s15 + $0x70] sm:$0xff]  ;;  %v704_v4 = vld [vmem:[%s1091_s15 + $0x28] sm:$0xff]  ;;  %s738_s24 = smul.u32 56, %s956_s12  ;;  %s485_s12 = scalar_lea.sflag [#allocation5], %s1087_s30 }
  0x27   : > { %425 = vmatpush.bf16.msra.mxu1 %v714_v1  ;;  %729 = vmatpush.bf16.msra.mxu3 %v714_v1  ;;  %v712_v5 = vld [vmem:[%s1091_s15 + $0x68] sm:$0xff]  ;;  %v703_v6 = vld [vmem:[%s1091_s15 + $0x20] sm:$0xff]  ;;  %v702_v8 = vld [vmem:[%s1091_s15 + $0x18] sm:$0xff]  ;;  %s1118_s19 = scalar_lea.vmem [#allocation8], %s737_s17 }
  0x28   : > { %v711_v7 = vld [vmem:[%s1091_s15 + $0x60] sm:$0xff]  ;;  %v710_v9 = vld [vmem:[%s1091_s15 + $0x58] sm:$0xff]  ;;  %v701_v10 = vld [vmem:[%s1091_s15 + $0x10] sm:$0xff]  ;;  %s496_s16 = scalar_lea.hbm %s1168_s2, %s738_s24  ;;  %s497_s21 = sshll.u32 %s1118_s19, 4  ;;  %s498_s21 = int_to_ptr.vmem [resolvable:$true] %s497_s21 }
  0x29   : > { %v709_v11 = vld [vmem:[%s1091_s15 + $0x50] sm:$0xff]  ;;  %v700_v12 = vld [vmem:[%s1091_s15 + $0x8] sm:$0xff]  ;;  %v699_v14 = vld [vmem:[%s1091_s15] sm:$0xff]  ;;  %s499_s22 = sshll.u32 %s496_s16, 4  ;;  %s500_s22 = int_to_ptr.hbm [resolvable:$true] %s499_s22 }
  0x2a   : > { %398 = vmatpush.bf16.msra.mxu0 %v705_v2  ;;  %722 = vmatpush.bf16.msra.mxu2 %v705_v2  ;;  %v708_v13 = vld [vmem:[%s1091_s15 + $0x48] sm:$0xff]  ;;  %v707_v15 = vld [vmem:[%s1091_s15 + $0x40] sm:$0xff]  ;;  %v256_v28 = vld [vmem:[#allocation6 + $0x30] sm:$0xff]  ;;  %s892_s23 = sshra.s32 %s500_s22, 4  ;;  %s893_s23 = int_to_ptr.hbm [resolvable:$true] %s892_s23 }
  0x2b   : > { %426 = vmatpush.bf16.msra.mxu1 %v713_v3  ;;  %730 = vmatpush.bf16.msra.mxu3 %v713_v3  ;;  %v609_v16 = vld [vmem:[#allocation6] sm:$0xf]  ;;  %v716_v17 = vld [vmem:[#allocation6 + $0x4] sm:$0xf0]  ;;  %v715_v20 = vld [vmem:[#allocation6 + $0x4] sm:$0xf]  ;;  %v283_v29 = vunpack.c.l.b16 %v256_v28  ;;  %v284_v32 = vunpack.c.h.b16 %v256_v28  ;;  %p899_p10 = scmp.lt.s32.totalorder %s893_s23, %s1168_s2 }
  0x2c   : > { %v625_v18 = vld [vmem:[#allocation6 + $0x20] sm:$0xf]  ;;  %v720_v19 = vld [vmem:[#allocation6 + $0x24] sm:$0xf0]  ;;  %v611_v21 = vld [vmem:[#allocation6 + $0x8] sm:$0xf0]  ;;  %v610_v24 = vor.u32 %v716_v17, %v609_v16 }
  0x2d   : > { %v719_v22 = vld [vmem:[#allocation6 + $0x24] sm:$0xf]  ;;  %v627_v23 = vld [vmem:[#allocation6 + $0x28] sm:$0xf0]  ;;  %v626_v25 = vor.u32 %v720_v19, %v625_v18  ;;  %v614_v26 = vor.u32 %v715_v20, %v611_v21  ;;  %v617_v30 = vld [vmem:[#allocation6 + $0x10] sm:$0xf]  ;;  %v291_v36 = vpack.c.b16 %v283_v29, %v283_v29  ;;  %v292_v38 = vpack.c.b16 %v284_v32, %v284_v32 }
  0x2e   : > { %399 = vmatpush.bf16.msra.mxu0 %v704_v4  ;;  %723 = vmatpush.bf16.msra.mxu2 %v704_v4  ;;  %v630_v27 = vor.u32 %v719_v22, %v627_v23  ;;  %v718_v31 = vld [vmem:[#allocation6 + $0x14] sm:$0xf0]  ;;  %v717_v33 = vld [vmem:[#allocation6 + $0x14] sm:$0xf]  ;;  %v619_v34 = vld [vmem:[#allocation6 + $0x18] sm:$0xf0] }
  0x2f   : > { %427 = vmatpush.bf16.msra.mxu1 %v712_v5  ;;  %731 = vmatpush.bf16.msra.mxu3 %v712_v5  ;;  %v618_v35 = vor.u32 %v718_v31, %v617_v30  ;;  %v622_v37 = vor.u32 %v717_v33, %v619_v34  ;;  %s894_s25 = scalar_lea.hbm %s893_s23, 56 }
  0x30   : > { %p895_p1 = scmp.ne.s32.totalorder %s893_s23, %s894_s25  ;;  %p900_p12 = scmp.lt.s32.totalorder %s898_s27, %s894_s25 }
  0x32   : > { %400 = vmatpush.bf16.msra.mxu0 %v703_v6  ;;  %724 = vmatpush.bf16.msra.mxu2 %v703_v6  ;;  %p896_p4 = pnand %p895_p1, %p1067_p5  ;;  %p901_p13 = por %p900_p12, %p899_p10 }
  0x33   : > { %428 = vmatpush.bf16.msra.mxu1 %v711_v7  ;;  %732 = vmatpush.bf16.msra.mxu3 %v711_v7 }
  0x34   : > { %p897_p8 = pneg %p896_p4 }
  0x36   : > { %401 = vmatpush.bf16.msra.mxu0 %v702_v8  ;;  %725 = vmatpush.bf16.msra.mxu2 %v702_v8  ;;  %p902_p0 = pnand %p901_p13, %p897_p8 }
  0x37   : > { %429 = vmatpush.bf16.msra.mxu1 %v710_v9  ;;  %733 = vmatpush.bf16.msra.mxu3 %v710_v9 }
  0x3a   : > { %402 = vmatpush.bf16.msra.mxu0 %v701_v10  ;;  %726 = vmatpush.bf16.msra.mxu2 %v701_v10 }
  0x3b   : > { %430 = vmatpush.bf16.msra.mxu1 %v709_v11  ;;  %734 = vmatpush.bf16.msra.mxu3 %v709_v11 }
  0x3e   : > { %403 = vmatpush.bf16.msra.mxu0 %v700_v12  ;;  %727 = vmatpush.bf16.msra.mxu2 %v700_v12 }
  0x3f   : > { %431 = vmatpush.bf16.msra.mxu1 %v708_v13  ;;  %735 = vmatpush.bf16.msra.mxu3 %v708_v13 }
  0x42   : > { %404 = vmatpush.bf16.msra.mxu0 %v699_v14  ;;  %728 = vmatpush.bf16.msra.mxu2 %v699_v14 }
  0x43   : > { %432 = vmatpush.bf16.msra.mxu1 %v707_v15  ;;  %736 = vmatpush.bf16.msra.mxu3 %v707_v15 }
  0x45   : > { %405 = vmatmul.bf16.vlgmr.msra.gmra.mxu0 %v610_v24  ;;  %415 = vmatmul.bf16.vlgmr.msra.gmra.mxu2 %v626_v25 }
  0x46   : > { %433 = vmatmul.bf16.vlgmr.msra.gmra.mxu1 %v614_v26  ;;  %443 = vmatmul.bf16.vlgmr.msra.gmra.mxu3 %v630_v27 }
  0x55   : > { %410 = vmatmul.bf16.gmra.mxu0 %v618_v35  ;;  %420 = vmatmul.bf16.gmra.mxu2 %v291_v36 }
  0x56   : > { %438 = vmatmul.bf16.gmra.mxu1 %v622_v37  ;;  %448 = vmatmul.bf16.gmra.mxu3 %v292_v38 }
  0xc2   : > { %v406_v39 = vpop.f32.mrf.mxu0 }
  0xc3   : > { %v434_v40 = vpop.f32.mrf.mxu1 }
  0xc4   : > { %v435_v41 = vadd.f32 %v434_v40, %v406_v39 }
  0xc6   : > { %477 = vst [vmem:[%s1118_s19] sm:$0xff] %v435_v41 }
  0xc8   : > { %v416_v42 = vpop.f32.mrf.mxu2 }
  0xc9   : > { %v444_v43 = vpop.f32.mrf.mxu3 }
  0xca   : > { %v445_v44 = vadd.f32 %v444_v43, %v416_v42  ;;  %v408_v45 = vpop.f32.mrf.mxu0 }
  0xcb   : > { %v436_v46 = vpop.f32.mrf.mxu1 }
  0xcc   : > { %481 = vst [vmem:[%s1118_s19 + $0x20] sm:$0xff] %v445_v44  ;;  %v437_v47 = vadd.f32 %v436_v46, %v408_v45 }
  0xce   : > { %478 = vst [vmem:[%s1118_s19 + $0x8] sm:$0xff] %v437_v47 }
  0xd0   : > { %v418_v48 = vpop.f32.mrf.mxu2 }
  0xd1   : > { %v446_v49 = vpop.f32.mrf.mxu3 }
  0xd2   : > { %v447_v50 = vadd.f32 %v446_v49, %v418_v48  ;;  %v411_v51 = vpop.f32.mrf.mxu0 }
  0xd3   : > { %v439_v52 = vpop.f32.mrf.mxu1 }
  0xd4   : > { %482 = vst [vmem:[%s1118_s19 + $0x28] sm:$0xff] %v447_v50  ;;  %v440_v53 = vadd.f32 %v439_v52, %v411_v51 }
  0xd6   : > { %479 = vst [vmem:[%s1118_s19 + $0x10] sm:$0xff] %v440_v53 }
  0xd8   : > { %v421_v54 = vpop.f32.mrf.mxu2 }
  0xd9   : > { %v449_v55 = vpop.f32.mrf.mxu3 }
  0xda   : > { %v450_v56 = vadd.f32 %v449_v55, %v421_v54  ;;  %v413_v57 = vpop.f32.mrf.mxu0 }
  0xdb   : > { %v441_v58 = vpop.f32.mrf.mxu1 }
  0xdc   : > { %483 = vst [vmem:[%s1118_s19 + $0x30] sm:$0xff] %v450_v56  ;;  %v442_v59 = vadd.f32 %v441_v58, %v413_v57 }
  0xde   : > { %480 = vst [vmem:[%s1118_s19 + $0x18] sm:$0xff] %v442_v59 }
  0xdf   : > { %905 = shalt.err (!%p902_p0)
}
  0xe0   : > { %s971_s30 = smov 128   ;;  %s972_s7 = smov 8   ;;  %v423_v60 = vpop.f32.mrf.mxu2 }
  0xe1   : > { %745 = dma.vmem_to_hbm [thread:$0]  (%p1067_p5), %s498_s21, 896, %s500_s22, %s485_s12, %s971_s30, %s971_s30, %s972_s7   ;;  %v451_v61 = vpop.f32.mrf.mxu3 }
  0xe2 PF: > { %s514_s15 = sand.u32 1, %s944_s9   ;;  %p756_p3 = pnand %p600_p11, %p1037_p6 }
  0xe3   : > { %s515_s17 = scalar_lea.sflag [#allocation5], %s514_s15 }
  0xe4   : > { %p757_p7 = pneg %p756_p3 }
  0xe6   : > { %939 = dma.done.wait (%p757_p7), %s515_s17, 896  }
  0xe7   : > { %941 = vsyncadd (%p757_p7), %s515_s17, 4294966400  ;;  %s19_s14 = sadd.s32 1, %s964_s14   ;;  %s1176_s9 = smov %s948_s10 }
  0xe8   : > { %p16_p9 = scmp.ge.s32.totalorder %s19_s14, 4   ;;  %s1177_s10 = smov %s952_s11 }
  0xe9   : > { %s1178_s11 = smov %s1076_s8  ;;  %s1179_s12 = smov %s960_s13 }
  0xea   : > { %s1180_s13 = smov %s1182_s29  ;;  %18 = sbr.rel (!%p16_p9) target bundleno = 7 (0x7), region = 86 }
  0xef   :  { %521 = vsyncpa [#allocation4], 1 }
  0xf0   :  { %523 = vsyncpa [#allocation4 + $0x1], 1 }
  0xf1   :  { %524 = vsyncpa [#allocation7], 1 }
  0xf2   :  { %525 = vsyncpa [#allocation5], 1 }
  0xf3   :  { %527 = vsyncpa [#allocation5 + $0x1], 1 }

</bundles_post_ra>
